<compile_context>
chip_gen: v6e
topology: v6e:2x2x1
jax: 0.10.0
libtpu: 0.0.40
codegen_flags: <defaults>
</compile_context>

<pallas_src>
import jax
import jax.numpy as jnp
from jax.experimental import pallas as pl
from jax.experimental.pallas import tpu as pltpu


def _fc_det_kernel(x_ref, w_ref, o_ref, acc_ref):
    # Zero the accumulator at the start of each reduction (K) sweep.
    @pl.when(pl.program_id(1) == 0)
    def _():
        acc_ref[...] = jnp.zeros_like(acc_ref)

    # out += x @ W.T  — contraction on axis 1 of both operands, so the
    # (TN, TK) weight tile is consumed directly (no .T / extra intermediate).
    acc_ref[...] += jax.lax.dot_general(
        x_ref[...],
        w_ref[...],
        dimension_numbers=(((1,), (1,)), ((), ())),
        preferred_element_type=jnp.float32,
    )

    # Write back once per output tile, on the last K step.
    @pl.when(pl.program_id(1) == pl.num_programs(1) - 1)
    def _():
        o_ref[...] = acc_ref[...].astype(o_ref.dtype)


def _round_up(x, m):
    return ((x + m - 1) // m) * m


def _pick_tile(dim, target):
    """Largest multiple of 128 <= target that evenly divides dim (dim % 128 == 0)."""
    best = 128
    t = 128
    while t <= min(target, dim):
        if dim % t == 0:
            best = t
        t += 128
    return best


def fc_deterministic(x, weight, *, tn_target=256, tk_target=512):
    """out = x @ weight.T via a tiled Pallas TPU matmul.

    x:      (batch, in_features)   float32
    weight: (out_features, in_features) float32
    """
    B, in_f = x.shape
    out_f, in_f_w = weight.shape
    assert in_f == in_f_w, "weight / input feature mismatch"

    # Pad to hardware-friendly shapes: sublane-multiple M, lane-multiple N/K.
    Mp = _round_up(max(B, 8), 8)
    Kp = _round_up(in_f, 128)
    Np = _round_up(out_f, 128)
    tk = _pick_tile(Kp, tk_target)
    tn = _pick_tile(Np, tn_target)

    x_p = jnp.pad(x.astype(jnp.float32), ((0, Mp - B), (0, Kp - in_f)))
    w_p = jnp.pad(weight.astype(jnp.float32), ((0, Np - out_f), (0, Kp - in_f)))

    grid = (Np // tn, Kp // tk)  # (N tiles: parallel, K tiles: reduction)

    out_p = pl.pallas_call(
        _fc_det_kernel,
        out_shape=jax.ShapeDtypeStruct((Mp, Np), jnp.float32),
        grid_spec=pltpu.PrefetchScalarGridSpec(
            num_scalar_prefetch=0,
            grid=grid,
            in_specs=[
                pl.BlockSpec((Mp, tk), lambda n, k: (0, k)),  # activations
                pl.BlockSpec((tn, tk), lambda n, k: (n, k)),  # weight (row-major)
            ],
            out_specs=pl.BlockSpec((Mp, tn), lambda n, k: (0, n)),
            scratch_shapes=[pltpu.VMEM((Mp, tn), jnp.float32)],
        ),
        compiler_params=pltpu.CompilerParams(
            dimension_semantics=("parallel", "arbitrary"),
        ),
    )(x_p, w_p)

    return out_p[:B, :out_f]


if __name__ == "__main__":
    # Small shapes consistent with the module; out_features is deliberately
    # NOT a multiple of 128 to exercise the lane-dense padding path, and the
    # small tile targets force a multi-step (2, 4) grid with K accumulation.
    in_features = 512
    out_features = 192
    batch = 8

    key = jax.random.PRNGKey(0)
    kx, kw = jax.random.split(key)

    x = jax.random.normal(kx, (batch, in_features), dtype=jnp.float32)

    # xavier_uniform_ with gain=1.0, matching FCDeterministic.__init__.
    bound = 1.0 * jnp.sqrt(6.0 / (in_features + out_features))
    weight = jax.random.uniform(
        kw, (out_features, in_features), dtype=jnp.float32,
        minval=-bound, maxval=bound,
    )

    out = fc_deterministic(x, weight, tn_target=128, tk_target=128)
    out = jax.block_until_ready(out)

    ref = x @ weight.T
    assert out.shape == (batch, out_features)
    assert bool(jnp.all(jnp.isfinite(out)))
    assert bool(jnp.allclose(out, ref, atol=1e-4, rtol=1e-4))
    print("KERNEL_OK")
</pallas_src>

<mosaic_0001>
module attributes {stable_mosaic.version = 11 : i64} {
  func.func @_fc_det_kernel(%arg0: i32, %arg1: i32, %arg2: memref<8x128xf32, #tpu.memory_space<vmem>>, %arg3: memref<128x128xf32, #tpu.memory_space<vmem>>, %arg4: memref<8x128xf32, #tpu.memory_space<vmem>>, %arg5: memref<8x128xf32, #tpu.memory_space<vmem>>) attributes {dimension_semantics = [#tpu.dimension_semantics<parallel>, #tpu.dimension_semantics<arbitrary>], iteration_bounds = array<i64: 2, 4>, scalar_prefetch = 0 : i64, scratch_operands = 1 : i64, tpu.core_type = #tpu.core_type<tc>, window_params = [{transform_indices = @transform_0, window_bounds = array<i64: 8, 128>}, {transform_indices = @transform_1, window_bounds = array<i64: 128, 128>}, {transform_indices = @transform_2, window_bounds = array<i64: 8, 128>}]} {
    %c0_i32 = arith.constant 0 : i32
    %0 = arith.cmpi eq, %arg1, %c0_i32 : i32
    %1 = arith.extui %0 : i1 to i32
    %c0_i32_0 = arith.constant 0 : i32
    %2 = arith.cmpi ne, %1, %c0_i32_0 : i32
    scf.if %2 {
      %cst_9 = arith.constant 0.000000e+00 : f32
      %12 = vector.broadcast %cst_9 : f32 to vector<8x128xf32>
      %c0_10 = arith.constant 0 : index
      %c0_11 = arith.constant 0 : index
      %13 = vector.load %arg5[%c0_10, %c0_11] : memref<8x128xf32, #tpu.memory_space<vmem>>, vector<8x128xf32>
      tpu.vector_store %arg5[%c0_10, %c0_11], %12 {strides = array<i32>} : memref<8x128xf32, #tpu.memory_space<vmem>>, vector<8x128xf32>,
    } else {
    }
    %c0 = arith.constant 0 : index
    %c0_1 = arith.constant 0 : index
    %3 = vector.load %arg5[%c0, %c0_1] : memref<8x128xf32, #tpu.memory_space<vmem>>, vector<8x128xf32>
    %c0_2 = arith.constant 0 : index
    %c0_3 = arith.constant 0 : index
    %4 = vector.load %arg2[%c0_2, %c0_3] : memref<8x128xf32, #tpu.memory_space<vmem>>, vector<8x128xf32>
    %c0_4 = arith.constant 0 : index
    %c0_5 = arith.constant 0 : index
    %5 = vector.load %arg3[%c0_4, %c0_5] : memref<128x128xf32, #tpu.memory_space<vmem>>, vector<128x128xf32>
    %cst = arith.constant dense<0.000000e+00> : vector<8x128xf32>
    %6 = tpu.matmul %4, %5, %cst {dimension_numbers = #tpu.dot_dimension_numbers<[1], [1], [0], [0], [0, 0, 1, 0], [], []>} : vector<8x128xf32>, vector<128x128xf32>, vector<8x128xf32> -> vector<8x128xf32>
    %7 = arith.addf %3, %6 : vector<8x128xf32>
    %c0_6 = arith.constant 0 : index
    %c0_7 = arith.constant 0 : index
    %8 = vector.load %arg5[%c0_6, %c0_7] : memref<8x128xf32, #tpu.memory_space<vmem>>, vector<8x128xf32>
    tpu.vector_store %arg5[%c0_6, %c0_7], %7 {strides = array<i32>} : memref<8x128xf32, #tpu.memory_space<vmem>>, vector<8x128xf32>,
    %c3_i32 = arith.constant 3 : i32
    %9 = arith.cmpi eq, %arg1, %c3_i32 : i32
    %10 = arith.extui %9 : i1 to i32
    %c0_i32_8 = arith.constant 0 : i32
    %11 = arith.cmpi ne, %10, %c0_i32_8 : i32
    scf.if %11 {
      %c0_9 = arith.constant 0 : index
      %c0_10 = arith.constant 0 : index
      %12 = vector.load %arg5[%c0_9, %c0_10] : memref<8x128xf32, #tpu.memory_space<vmem>>, vector<8x128xf32>
      %c0_11 = arith.constant 0 : index
      %c0_12 = arith.constant 0 : index
      %13 = vector.load %arg4[%c0_11, %c0_12] : memref<8x128xf32, #tpu.memory_space<vmem>>, vector<8x128xf32>
      tpu.vector_store %arg4[%c0_11, %c0_12], %12 {strides = array<i32>} : memref<8x128xf32, #tpu.memory_space<vmem>>, vector<8x128xf32>,
    } else {
    }
    return
  }
  func.func @transform_0(%arg0: i32, %arg1: i32) -> (i32, i32) {
    %c0_i32 = arith.constant 0 : i32
    %c0_i32_0 = arith.constant 0 : i32
    return %c0_i32, %arg1 : i32, i32
  }
  func.func @transform_1(%arg0: i32, %arg1: i32) -> (i32, i32) {
    %c0_i32 = arith.constant 0 : i32
    return %arg0, %arg1 : i32, i32
  }
  func.func @transform_2(%arg0: i32, %arg1: i32) -> (i32, i32) {
    %c0_i32 = arith.constant 0 : i32
    %c0_i32_0 = arith.constant 0 : i32
    return %c0_i32, %arg0 : i32, i32
  }
}

</mosaic_0001>

<bundles_post_ra>
// kernel: tpu_custom_call.1
= control target key start
LH: loop header
LB: loop body
LE: loop exit
PB: predicated region body
PF: predicated region fallthrough
CT: control target
= control target key end

     0   :  { %s1179_s0 = inlined_call_operand.hbm [shape: f32[8,512], index: 0, kind: input, shape index: {}]   ;;  %s1180_s1 = inlined_call_operand.hbm [shape: f32[256,512], index: 1, kind: input, shape index: {}]   ;;  %s1181_s2 = inlined_call_operand.hbm [shape: f32[8,256], index: 2, kind: output, shape index: {}]  }
   0x1   :  { %1188 = sst [smem:[#allocation20_spill]] %s1179_s0 }
   0x2   :  { %7 = vsyncpa [#allocation4], 0 }
   0x3   :  { %9 = vsyncpa [#allocation4 + $0x1], 0 }
   0x4   :  { %10 = vsyncpa [#allocation7], 0 }
   0x5   :  { %12 = vsyncpa [#allocation7 + $0x1], 0 }
   0x6   :  { %13 = vsyncpa [#allocation5], 0 }
   0x7   :  { %15 = vsyncpa [#allocation5 + $0x1], 0  ;;  %s877_s9 = smov 0   ;;  %s879_s10 = smov 0  }
   0x8   :  { %s881_s11 = smov 0   ;;  %s883_s12 = smov 0  }
   0x9   :  { %s885_s13 = smov 0   ;;  %s887_s14 = smov 0  }
   0xa   :  { %s889_s15 = smov 0   ;;  %s891_s16 = smov 0  }
   0xb   :  { %s893_s17 = smov 0   ;;  %s895_s18 = smov 0  }
   0xc   :  { %s897_s19 = smov 0   ;;  %s899_s20 = smov 0  }
   0xd   :  { %s901_s21 = smov 0   ;;  %s903_s22 = smov 0  }
   0xe LB: > { %1189 = sst [smem:[#allocation12_spill]] %s807_s11  ;;  %s437_s23 = sadd.s32 4294967295, %s851_s22   ;;  %s851_s22 = sphi %s903_s22, %s21_s22   ;;  %s847_s21 = sphi %s901_s21, %s1229_s21   ;;  %s843_s20 = sphi %s899_s20, %s1228_s20   ;;  %s839_s19 = sphi %s897_s19, %s1227_s19   ;;  %s835_s18 = sphi %s895_s18, %s1226_s18   ;;  %s831_s17 = sphi %s893_s17, %s1216_s17   ;;  %s827_s16 = sphi %s891_s16, %s1225_s16   ;;  %s823_s15 = sphi %s889_s15, %s1224_s15   ;;  %s819_s14 = sphi %s887_s14, %s1223_s14   ;;  %s815_s13 = sphi %s885_s13, %s1222_s13   ;;  %s811_s12 = sphi %s883_s12, %s1221_s12   ;;  %s807_s11 = sphi %s881_s11, %s1213_s11   ;;  %s803_s10 = sphi %s879_s10, %s1220_s10   ;;  %s799_s9 = sphi %s877_s9, %s1219_s9  }
   0xf   : > { %1190 = sst [smem:[#allocation13_spill]] %s831_s17  ;;  %s438_s24 = sadd.s32 4294967294, %s851_s22  }
  0x10   : > { %s30_s25 = sadd.s32 1, %s843_s20  ;;  %s33_s26 = sadd.s32 1, %s847_s21 }
  0x11   : > { %p31_p0 = scmp.ge.s32.totalorder %s30_s25, 4  ;;  %s40_s27 = sadd.s32 1, %s831_s17 }
  0x12   : > { %p47_p1 = scmp.ne.s32.totalorder %s831_s17, %s827_s16  ;;  %p48_p2 = scmp.eq.s32.totalorder %s851_s22, 0 }
  0x13   : > { %s1231_s25 = smov (%p31_p0, %s30_s25), 0  ;;  %s1233_s26 = smov (!%p31_p0, %s33_s26), %s847_s21 }
  0x14   : > { %1191 = sst [smem:[#allocation14_spill]] %s1231_s25  ;;  %s37_s28 = ssub.s32 %s843_s20, %s1231_s25 }
  0x15   : > { %p960_p3 = por %p48_p2, %p47_p1  ;;  %p35_p4 = scmp.ge.s32.totalorder %s1233_s26, 2 }
  0x16   : > { %p38_p5 = scmp.eq.s32.totalorder %s37_s28, 0  ;;  %p53_p6 = scmp.ne.s32.totalorder %s827_s16, %s823_s15 }
  0x17   : > { %p967_p7 = scmp.eq.s32.totalorder %s437_s23, 0  ;;  %s1235_s26 = smov (%p35_p4, %s1233_s26), 0 }
  0x18   : > { %1194 = sst [smem:[#allocation15_spill]] %s1235_s26  ;;  %s63_s5 = ssub.s32 %s847_s21, %s1235_s26 }
  0x19   : > { %s974_s3 = scalar_select %p38_p5, %s831_s17, %s40_s27  }
  0x1a   : > { %p978_p8 = por %p967_p7, %p53_p6  ;;  %s65_s6 = sor.u32 %s63_s5, %s37_s28 }
  0x1b   : > { %1195 = sst [smem:[#allocation16_spill]] %s974_s3  ;;  %s68_s7 = sadd.s32 1, %s819_s14 }
  0x1c   : > { %p66_p9 = scmp.eq.s32.totalorder %s65_s6, 0  ;;  %p75_p10 = scmp.ne.s32.totalorder %s819_s14, %s815_s13 }
  0x1d   : > { %p81_p11 = scmp.ne.s32.totalorder %s815_s13, %s811_s12  ;;  %p92_p12 = scmp.eq.s32.totalorder %s63_s5, 0 }
  0x1e   : > { %s990_s8 = scalar_select %p66_p9, %s819_s14, %s68_s7  }
  0x1f   : > { %p994_p13 = por %p75_p10, %p48_p2  ;;  %p1000_p0 = por %p81_p11, %p967_p7 }
  0x20   : > { %1197 = sst [smem:[#allocation17_spill]] %s990_s8  ;;  %s94_s28 = sadd.s32 1, %s807_s11 }
  0x21   : > { %p104_p1 = scmp.ne.s32.totalorder %s807_s11, %s803_s10  ;;  %p105_p4 = scmp.eq.s32.totalorder %s437_s23, 7 }
  0x22   : > { %s1008_s6 = scalar_select %p92_p12, %s807_s11, %s94_s28  }
  0x23   : > { %p110_p5 = scmp.ne.s32.totalorder %s803_s10, %s799_s9  ;;  %p111_p2 = scmp.eq.s32.totalorder %s438_s24, 7 }
  0x24   : > { %1200 = sst [smem:[#allocation18_spill]] %s1008_s6  ;;  %p1016_p6 = por %p105_p4, %p104_p1 }
  0x25   : > { %p527_p7 = scmp.lt.s32.totalorder %s851_s22, 8  ;;  %p1021_p9 = por %p111_p2, %p110_p5 }
  0x26   : > { %s1201_s12 = scalar_select %p1016_p6, 1, 0 }
  0x27   : > { %s1202_s30 = scalar_select %p1021_p9, 1, 0 }
  0x28   : > { %s131_s5 = sand.u32 1, %s831_s17   ;;  %s442_s28 = sshll.u32 %s843_s20, 7 }
  0x29   : > { %1203 = sst [smem:[#allocation19_spill]] %s1202_s30  ;;  %s441_s7 = sshll.u32 %s131_s5, 3 }
  0x2a   : > { %s1204_s0 = sld [smem:[#allocation20_spill]]  ;;  %s135_s3 = scalar_lea.vmem [#allocation3], %s441_s7 }
  0x2b   : > { %s142_s8 = sshll.u32 %s135_s3, 4  ;;  %p1032_p10 = pnand %p527_p7, %p960_p3  ;;  %s143_s8 = int_to_ptr.vmem [resolvable:$true] %s142_s8 }
  0x2c   : > { %s457_s6 = sshll.u32 %s847_s21, 6  ;;  %p1039_p11 = pnand %p527_p7, %p994_p13 }
  0x2d   : > { %s159_s17 = sadd.s32 %s843_s20, %s457_s6  ;;  %s132_s30 = scalar_lea.sflag [#allocation4], %s131_s5 }
  0x2e   : > { %p649_p12 = pneg %p1032_p10  ;;  %s660_s25 = scalar_lea.vmem %s143_s8, 128 }
  0x2f   : > { %p661_p1 = scmp.ne.s32.totalorder %s143_s8, %s660_s25  ;;  %s853_s26 = smov [#allocation3]  }
  0x30   : > { %s140_s23 = scalar_lea.hbm %s1204_s0, %s442_s28  ;;  %s665_s29 = sshll.u32 %s853_s26, 4  ;;  %s666_s29 = int_to_ptr.vmem [resolvable:$false] %s665_s29 }
  0x31   : > { %p663_p4 = pnand %p661_p1, %p649_p12  ;;  %s667_s3 = scalar_lea.vmem %s666_s29, 256 }
  0x32   : > { %p668_p3 = scmp.lt.s32.totalorder %s143_s8, %s666_s29  ;;  %p669_p2 = scmp.lt.s32.totalorder %s667_s3, %s660_s25 }
  0x33   : > { %p664_p5 = pneg %p663_p4 }
  0x34   : > { %p670_p9 = por %p669_p2, %p668_p3 }
  0x36   : > { %p671_p6 = pnand %p670_p9, %p664_p5 }
  0x38   : > { %674 = shalt.err (!%p671_p6)
}
  0x39   : > { %519 = dma.hbm_to_vmem [thread:$0]  (!%p1032_p10), %s140_s23, 128, %s143_s8, %s132_s30  }
  0x3a   : > { %p447_p13 = scmp.ge.s32.totalorder %s851_s22, 1  ;;  %p170_p7 = scmp.lt.s32.totalorder %s851_s22, 9 }
  0x3b   : > { %s149_s15 = sand.u32 1, %s819_s14   ;;  %s446_s7 = sshll.u32 %s159_s17, 7 }
  0x3c   : > { %s443_s6 = sshll.u32 %s149_s15, 7  ;;  %p1051_p12 = pnand %p447_p13, %p170_p7 }
  0x3d   : > { %s153_s28 = scalar_lea.vmem [#allocation6], %s443_s6  ;;  %s161_s24 = scalar_lea.hbm %s1180_s1, %s446_s7 }
  0x3e   : > { %s162_s25 = sshll.u32 %s153_s28, 4  ;;  %s150_s3 = scalar_lea.sflag [#allocation7], %s149_s15  ;;  %s163_s25 = int_to_ptr.vmem [resolvable:$true] %s162_s25 }
  0x3f   : > { %p677_p6 = pneg %p1039_p11  ;;  %s688_s8 = scalar_lea.vmem %s163_s25, 2048 }
  0x40   : > { %p689_p9 = scmp.ne.s32.totalorder %s163_s25, %s688_s8  ;;  %s854_s30 = smov [#allocation6]  }
  0x41   : > { %s693_s23 = sshll.u32 %s854_s30, 4  ;;  %s694_s23 = int_to_ptr.vmem [resolvable:$false] %s693_s23 }
  0x42   : > { %p691_p10 = pnand %p689_p9, %p677_p6  ;;  %s695_s0 = scalar_lea.vmem %s694_s23, 4096 }
  0x43   : > { %p696_p4 = scmp.lt.s32.totalorder %s163_s25, %s694_s23  ;;  %p697_p5 = scmp.lt.s32.totalorder %s695_s0, %s688_s8 }
  0x44   : > { %p692_p1 = pneg %p691_p10 }
  0x45   : > { %p698_p3 = por %p697_p5, %p696_p4 }
  0x47   : > { %p699_p2 = pnand %p698_p3, %p692_p1 }
  0x49   : > { %702 = shalt.err (!%p699_p2)
}
  0x4a   : > { %s855_s17 = smov 512   ;;  %s856_s6 = smov 128  }
  0x4b   : > { %s857_s7 = smov 8   ;;  %174 = sbr.rel (%p1051_p12) target bundleno = 387 (0x183), region = 28 }
  0x4c   : > { %522 = dma.hbm_to_vmem [thread:$0]  (!%p1039_p11), %s161_s24, 2048, %s163_s25, %s150_s3, %s855_s17, %s856_s6, %s857_s7  }
  0x4d   : > { %s176_s15 = sand.u32 (!%p1051_p12), 1, %s827_s16  }
  0x4e   : > { %s1065_s28 = sshll.u32 (!%p1051_p12), %s176_s15, 3  ;;  %s177_s26 = scalar_lea.sflag (!%p1051_p12), [#allocation4], %s176_s15 }
  0x4f   : > { %s180_s0 = scalar_lea.vmem (!%p1051_p12), [#allocation3], %s1065_s28 }
  0x50   : > { %786 = dma.done.wait (%p978_p8), %s177_s26, 128  }
  0x51   : > { %788 = vsyncadd (%p978_p8), %s177_s26, 4294967168  ;;  %s185_s11 = sand.u32 1, %s815_s13  }
  0x52   : > { %s449_s25 = sshll.u32 %s185_s11, 7  ;;  %s186_s29 = scalar_lea.sflag [#allocation7], %s185_s11 }
  0x53   : > { %s1073_s5 = scalar_lea.vmem [#allocation6], %s449_s25 }
  0x54   : > { %790 = dma.done.wait (%p1000_p0), %s186_s29, 2048  }
  0x55   : > { %792 = vsyncadd (%p1000_p0), %s186_s29, 4294965248  ;;  %s212_s24 = sand.u32 1, %s803_s10   ;;  %p451_p8 = scmp.ne.s32.totalorder %s835_s18, 0 }
  0x56   : > { %s1082_s3 = sshll.u32 %s212_s24, 3 }
  0x57   : > { %s214_s4 = scalar_lea.vmem [#allocation8], %s1082_s3  ;;  %219 = sbr.rel (%p451_p8) target bundleno = 94 (0x5e), region = 40 }
  0x5c   : > { %v858_v0 = vmov 0.0  }
  0x5d   : > { %220 = vst [vmem:[#allocation2] sm:$0xff] %v858_v0 }
  0x5e PF: > { %v238_v1 = vld [vmem:[%s1073_s5 + $0x78] sm:$0xff]  ;;  %v859_v2 = vmov 0.0   ;;  %vm860_vm0 = vmmov 0   ;;  %v237_v3 = vld [vmem:[%s1073_s5 + $0x70] sm:$0xff]  ;;  %v236_v4 = vld [vmem:[%s1073_s5 + $0x68] sm:$0xff]  ;;  %p452_p0 = scmp.ne.s32.totalorder %s835_s18, 3 }
  0x5f   : > { %475 = vmatprep.subr.mxu0 %v859_v2  ;;  %507 = vmatprep.mubr.msk.f32.mxu0 %vm860_vm0, %v859_v2  ;;  %v235_v5 = vld [vmem:[%s1073_s5 + $0x60] sm:$0xff]  ;;  %v234_v6 = vld [vmem:[%s1073_s5 + $0x58] sm:$0xff]  ;;  %v233_v7 = vld [vmem:[%s1073_s5 + $0x50] sm:$0xff] }
  0x60   : > { %476 = vmatpush3.xpose.msra.mxu0 %v238_v1  ;;  %v232_v8 = vld [vmem:[%s1073_s5 + $0x48] sm:$0xff]  ;;  %v231_v9 = vld [vmem:[%s1073_s5 + $0x40] sm:$0xff]  ;;  %v230_v10 = vld [vmem:[%s1073_s5 + $0x38] sm:$0xff] }
  0x61   : > { %477 = vmatprep.subr.mxu0 %v859_v2  ;;  %v229_v11 = vld [vmem:[%s1073_s5 + $0x30] sm:$0xff]  ;;  %v228_v12 = vld [vmem:[%s1073_s5 + $0x28] sm:$0xff]  ;;  %v227_v13 = vld [vmem:[%s1073_s5 + $0x20] sm:$0xff] }
  0x62   : > { %v226_v14 = vld [vmem:[%s1073_s5 + $0x18] sm:$0xff]  ;;  %v225_v15 = vld [vmem:[%s1073_s5 + $0x10] sm:$0xff]  ;;  %v224_v16 = vld [vmem:[%s1073_s5 + $0x8] sm:$0xff] }
  0x63   : > { %v223_v17 = vld [vmem:[%s1073_s5] sm:$0xff]  ;;  %v222_v18 = vld [vmem:[%s180_s0] sm:$0xff] }
  0x64   : > { %478 = vmatpush3.xpose.msra.mxu0 %v237_v3  ;;  %v221_v19 = vld [vmem:[#allocation2] sm:$0xff] }
  0x65   : > { %479 = vmatprep.subr.mxu0 %v859_v2 }
  0x68   : > { %480 = vmatpush3.xpose.msra.mxu0 %v236_v4 }
  0x69   : > { %481 = vmatprep.subr.mxu0 %v859_v2 }
  0x6c   : > { %482 = vmatpush3.xpose.msra.mxu0 %v235_v5 }
  0x6d   : > { %483 = vmatprep.subr.mxu0 %v859_v2 }
  0x70   : > { %484 = vmatpush3.xpose.msra.mxu0 %v234_v6 }
  0x71   : > { %485 = vmatprep.subr.mxu0 %v859_v2 }
  0x74   : > { %486 = vmatpush3.xpose.msra.mxu0 %v233_v7 }
  0x75   : > { %487 = vmatprep.subr.mxu0 %v859_v2 }
  0x78   : > { %488 = vmatpush3.xpose.msra.mxu0 %v232_v8 }
  0x79   : > { %489 = vmatprep.subr.mxu0 %v859_v2 }
  0x7c   : > { %490 = vmatpush3.xpose.msra.mxu0 %v231_v9 }
  0x7d   : > { %491 = vmatprep.subr.mxu0 %v859_v2 }
  0x80   : > { %492 = vmatpush3.xpose.msra.mxu0 %v230_v10 }
  0x81   : > { %493 = vmatprep.subr.mxu0 %v859_v2 }
  0x84   : > { %494 = vmatpush3.xpose.msra.mxu0 %v229_v11 }
  0x85   : > { %495 = vmatprep.subr.mxu0 %v859_v2 }
  0x88   : > { %496 = vmatpush3.xpose.msra.mxu0 %v228_v12 }
  0x89   : > { %497 = vmatprep.subr.mxu0 %v859_v2 }
  0x8c   : > { %498 = vmatpush3.xpose.msra.mxu0 %v227_v13 }
  0x8d   : > { %499 = vmatprep.subr.mxu0 %v859_v2 }
  0x90   : > { %500 = vmatpush3.xpose.msra.mxu0 %v226_v14 }
  0x91   : > { %501 = vmatprep.subr.mxu0 %v859_v2 }
  0x94   : > { %502 = vmatpush3.xpose.msra.mxu0 %v225_v15 }
  0x95   : > { %503 = vmatprep.subr.mxu0 %v859_v2 }
  0x98   : > { %504 = vmatpush3.xpose.msra.mxu0 %v224_v16 }
  0x99   : > { %505 = vmatprep.subr.mxu0 %v859_v2 }
  0x9c   : > { %506 = vmatpush3.xpose.msra.mxu0 %v223_v17 }
  0x9f   : > { %508 = vmatmul.mubr.f32.vlgmr.msra.gmra.mxu0 %v222_v18 }
 0x15e   : > { %314 = sbr.rel (%p452_p0) target bundleno = 363 (0x16b), region = 44 }
 0x15f   : > { %v305_v20 = vpop.f32.mrf.mxu0 }
 0x160   : > { %v309_v21 = vadd.f32 %v305_v20, %v221_v19 }
 0x161   : > { %v509_v22 = vpop.f32.mrf.mxu0 }
 0x162   : > { %310 = vst [vmem:[#allocation2] sm:$0xff] %v309_v21 }
 0x169   : > { %v315_v23 = vld [vmem:[#allocation2] sm:$0xff] }
 0x16a   : > { %316 = vst [vmem:[%s214_s4] sm:$0xff] %v315_v23 }
 0x16b PF: > { %s454_s27 = sshll.u32 %s839_s19, 7  ;;  %s331_s17 = sshll.u32 %s214_s4, 4  ;;  %s332_s17 = int_to_ptr.vmem [resolvable:$true] %s331_s17 }
 0x16c   : > { %s329_s23 = scalar_lea.hbm %s1181_s2, %s454_s27  ;;  %s318_s18 = scalar_lea.sflag [#allocation5], %s212_s24 }
 0x16d   : > { %s703_s6 = scalar_lea.vmem %s332_s17, 128  ;;  %p1208_p13 = scmp.ne.s32.totalorder %s1201_s12, 0 }
 0x16e   : > { %p704_p11 = scmp.ne.s32.totalorder %s332_s17, %s703_s6  ;;  %s861_s7 = smov [#allocation8]  }
 0x16f   : > { %s707_s15 = sshll.u32 %s861_s7, 4  ;;  %s708_s15 = int_to_ptr.vmem [resolvable:$false] %s707_s15 }
 0x170   : > { %p705_p7 = pnand %p704_p11, %p1208_p13  ;;  %s709_s28 = scalar_lea.vmem %s708_s15, 256 }
 0x171   : > { %p710_p6 = scmp.lt.s32.totalorder %s332_s17, %s708_s15  ;;  %p711_p9 = scmp.lt.s32.totalorder %s709_s28, %s703_s6 }
 0x172   : > { %p706_p12 = pneg %p705_p7 }
 0x173   : > { %p712_p10 = por %p711_p9, %p710_p6 }
 0x175   : > { %p713_p1 = pnand %p712_p10, %p706_p12 }
 0x177   : > { %716 = shalt.err (!%p713_p1)
}
 0x178   : > { %s717_s19 = scalar_lea.hbm %s329_s23, 128  ;;  %s721_s11 = scalar_lea.hbm %s1181_s2, 256 }
 0x179   : > { %p718_p4 = scmp.ne.s32.totalorder %s329_s23, %s717_s19  ;;  %p722_p2 = scmp.lt.s32.totalorder %s329_s23, %s1181_s2 }
 0x17a   : > { %p723_p8 = scmp.lt.s32.totalorder %s721_s11, %s717_s19 }
 0x17b   : > { %p719_p5 = pnand %p718_p4, %p1208_p13 }
 0x17c   : > { %p724_p0 = por %p723_p8, %p722_p2 }
 0x17d   : > { %p720_p3 = pneg %p719_p5 }
 0x17f   : > { %p725_p11 = pnand %p724_p0, %p720_p3 }
 0x181   : > { %728 = shalt.err (!%p725_p11)
}
 0x182   : > { %514 = dma.vmem_to_hbm [thread:$0]  (%p1208_p13), %s332_s17, 128, %s329_s23, %s318_s18  }
 0x183 PF: > { %s1209_s5 = sld [smem:[#allocation19_spill]]  ;;  %p528_p7 = scmp.ge.s32.totalorder %s851_s22, 2 }
 0x184   : > { %s343_s24 = sand.u32 1, %s799_s9  }
 0x185   : > { %s344_s3 = scalar_lea.sflag [#allocation5], %s343_s24 }
 0x189   : > { %p1210_p12 = scmp.ne.s32.totalorder %s1209_s5, 0 }
 0x18b   : > { %p524_p6 = pnand %p528_p7, %p1210_p12 }
 0x18d   : > { %p525_p9 = pneg %p524_p6 }
 0x18f   : > { %794 = dma.done.wait (%p525_p9), %s344_s3, 128  }
 0x190   : > { %796 = vsyncadd (%p525_p9), %s344_s3, 4294967168  ;;  %s21_s22 = sadd.s32 1, %s851_s22   ;;  %s1212_s12 = sld [smem:[#allocation12_spill]] }
 0x191   : > { %p1132_p10 = scmp.ge.s32.totalorder %s21_s22, 10   ;;  %s1213_s11 = sld [smem:[#allocation18_spill]] }
 0x192   : > { %s1214_s27 = sld [smem:[#allocation17_spill]]  ;;  %s1219_s9 = smov %s803_s10 }
 0x193   : > { %s1215_s8 = sld [smem:[#allocation13_spill]]  ;;  %s1224_s15 = smov %s827_s16 }
 0x194   : > { %s1216_s17 = sld [smem:[#allocation16_spill]]  ;;  %s1226_s18 = smov %s843_s20 }
 0x195   : > { %s1217_s30 = sld [smem:[#allocation14_spill]]  ;;  %s1227_s19 = smov %s847_s21 }
 0x196   : > { %s1218_s23 = sld [smem:[#allocation15_spill]]  ;;  %s1220_s10 = smov %s1212_s12 }
 0x197   : > { %s1221_s12 = smov %s815_s13  ;;  %s1222_s13 = smov %s819_s14 }
 0x198   : > { %s1223_s14 = smov %s1214_s27  ;;  %20 = sbr.rel (!%p1132_p10) target bundleno = 14 (0xe), region = 94 }
 0x199   : > { %s1225_s16 = smov %s1215_s8 }
 0x19b   : > { %s1228_s20 = smov %s1217_s30 }
 0x19c   : > { %s1229_s21 = smov %s1218_s23 }
 0x19d   :  { %349 = vsyncpa [#allocation4], 1 }
 0x19e   :  { %351 = vsyncpa [#allocation4 + $0x1], 1 }
 0x19f   :  { %352 = vsyncpa [#allocation7], 1 }
 0x1a0   :  { %354 = vsyncpa [#allocation7 + $0x1], 1 }
 0x1a1   :  { %355 = vsyncpa [#allocation5], 1 }
 0x1a2   :  { %357 = vsyncpa [#allocation5 + $0x1], 1 }

</bundles_post_ra>
